<compile_context>
chip_gen: v5e
topology: v5e:2x2
jax: 0.10.0
libtpu: 0.0.40
codegen_flags: <defaults>
</compile_context>

<pallas_src>
import functools

import jax
import jax.numpy as jnp
from jax import lax
from jax.experimental import pallas as pl
from jax.experimental.pallas import tpu as pltpu

_ACC_ROWS = 32          # resident accumulator rows (multiple of 8/16/32 packing)
_MIB = 1024 * 1024


def _vmem_capacity_bytes():
    """Physical VMEM per TensorCore; conservative fallback if unavailable."""
    try:
        cap = getattr(pltpu.get_tpu_info(), "vmem_capacity_bytes", None)
        if cap:
            return int(cap)
    except Exception:
        pass
    # v5e/v6e-class sizing; the resulting limits are also safe on v7x.
    return 128 * _MIB


def _softplus_neg(pos, neg):
    """log(1 + exp(-(pos - neg))) elementwise, numerically stable, in f32."""
    d = pos.astype(jnp.float32) - neg.astype(jnp.float32)
    return jnp.maximum(-d, 0.0) + jnp.log(1.0 + jnp.exp(-jnp.abs(d)))


def _bpr_small_kernel(pos_ref, neg_ref, out_ref):
    # Whole arrays resident in VMEM; reduce rows here, lanes in the wrapper.
    elem = _softplus_neg(pos_ref[...], neg_ref[...])
    out_ref[...] = jnp.sum(elem, axis=0, keepdims=True)


def _bpr_tiled_kernel(pos_ref, neg_ref, out_ref, *, tile_rows, rows_valid,
                      need_mask):
    # out_ref: (_ACC_ROWS, C) f32 block, resident across the reduction axis (1).
    @pl.when(pl.program_id(1) == 0)
    def _init():
        out_ref[...] = jnp.zeros_like(out_ref)

    elem = _softplus_neg(pos_ref[...], neg_ref[...])

    if need_mask:
        # Ragged last block: zero contributions from rows past the real array.
        blk = pl.program_id(0) * pl.num_programs(1) + pl.program_id(1)
        row_ids = blk * tile_rows + lax.broadcasted_iota(jnp.int32, elem.shape, 0)
        elem = jnp.where(row_ids < rows_valid, elem, 0.0)

    rows, lanes = elem.shape
    # (tile_rows, C) -> (_ACC_ROWS, C) with VPU adds only; the tiny final
    # reduce of the partials happens once, in the wrapper.
    out_ref[...] += elem.reshape(rows // _ACC_ROWS, _ACC_ROWS, lanes).sum(axis=0)


def bpr_loss(pos_preds, neg_preds, *, target_block_bytes=None):
    """sum(log(1 + exp(-(pos_preds - neg_preds)))) via Pallas on TPU."""
    assert pos_preds.shape == neg_preds.shape
    assert pos_preds.dtype == neg_preds.dtype
    itemsize = jnp.dtype(pos_preds.dtype).itemsize

    # 2-D view: merge leading dims, keep the native minor dim (free reshape —
    # no relayout, no padding, no extra HBM round trip).
    if pos_preds.ndim >= 2:
        cols = pos_preds.shape[-1]
        pos2d = pos_preds.reshape(-1, cols)
        neg2d = neg_preds.reshape(-1, cols)
    else:
        pos2d = pos_preds.reshape(1, -1)
        neg2d = neg_preds.reshape(1, -1)
        cols = pos2d.shape[-1]
    rows = pos2d.shape[0]

    # Generation-aware sizing (v7x-class 64 MiB VMEM -> 8 MiB blocks / ~48 MiB
    # limit; v5e/v6e 128 MiB -> 4 MiB blocks / 32 MiB limit).
    vmem_cap = _vmem_capacity_bytes()
    if target_block_bytes is None:
        target_block_bytes = 8 * _MIB if vmem_cap <= 64 * _MIB else 4 * _MIB

    padded_row_bytes = ((cols + 127) // 128) * 128 * itemsize   # lane-padded
    max_tile_rows = max(
        _ACC_ROWS,
        (target_block_bytes // padded_row_bytes) // _ACC_ROWS * _ACC_ROWS)

    if rows <= max_tile_rows:
        # Small input: single invocation, whole arrays resident in VMEM.
        # TODO(synk): rows wider than ~VMEM would additionally need lane
        # blocking; not expected for BPR prediction scores.
        limit = min(vmem_cap * 3 // 4, 2 * rows * padded_row_bytes + 16 * _MIB)
        partial = pl.pallas_call(
            _bpr_small_kernel,
            out_shape=jax.ShapeDtypeStruct((1, cols), jnp.float32),
            compiler_params=pltpu.CompilerParams(vmem_limit_bytes=limit),
        )(pos2d, neg2d)
        return jnp.sum(partial)

    tile_rows = max_tile_rows                      # multiple of 32, <= rows
    n_blocks = pl.cdiv(rows, tile_rows)
    if n_blocks >= 2 and n_blocks % 2 == 0:
        # Dual-TensorCore opportunity on v7x via the "parallel" leading axis;
        # a harmless sequential outer loop on single-TC chips.
        n_splits, n_steps = 2, n_blocks // 2
    else:
        n_splits, n_steps = 1, n_blocks
    need_mask = (n_blocks * tile_rows != rows)

    kernel = functools.partial(_bpr_tiled_kernel, tile_rows=tile_rows,
                               rows_valid=rows, need_mask=need_mask)

    block_bytes = tile_rows * padded_row_bytes     # per input, per buffer
    limit = min(vmem_cap * 3 // 4, 4 * block_bytes + 16 * _MIB)

    in_map = lambda c, i: (c * n_steps + i, 0)
    partials = pl.pallas_call(
        kernel,
        out_shape=jax.ShapeDtypeStruct((n_splits * _ACC_ROWS, cols), jnp.float32),
        grid_spec=pltpu.PrefetchScalarGridSpec(
            num_scalar_prefetch=0,
            grid=(n_splits, n_steps),
            in_specs=[
                pl.BlockSpec((tile_rows, cols), in_map),
                pl.BlockSpec((tile_rows, cols), in_map),
            ],
            out_specs=pl.BlockSpec((_ACC_ROWS, cols), lambda c, i: (c, 0)),
        ),
        compiler_params=pltpu.CompilerParams(
            dimension_semantics=("parallel", "arbitrary"),
            vmem_limit_bytes=limit,
        ),
    )(pos2d, neg2d)

    # Final tiny reduction of the (n_splits * 32, cols) f32 partials.
    return jnp.sum(partials)


if __name__ == "__main__":
    key = jax.random.PRNGKey(0)
    k1, k2, k3, k4 = jax.random.split(key, 4)

    def ref_loss(p, n):
        d = p.astype(jnp.float32) - n.astype(jnp.float32)
        return jnp.sum(jnp.log(1.0 + jnp.exp(-d)))

    # 1) Tiny, ragged shape -> single-invocation whole-array path.
    pos_s = jax.random.normal(k1, (5, 7), dtype=jnp.float32)
    neg_s = jax.random.normal(k2, (5, 7), dtype=jnp.float32)
    out_s = jax.block_until_ready(bpr_loss(pos_s, neg_s))
    assert jnp.allclose(out_s, ref_loss(pos_s, neg_s), rtol=1e-5, atol=1e-5), out_s

    # 2) Batch of prediction scores, auto (generation-aware) tiling.
    pos_b = jax.random.normal(k3, (2048, 300), dtype=jnp.float32)
    neg_b = jax.random.normal(k4, (2048, 300), dtype=jnp.float32)
    ref_b = ref_loss(pos_b, neg_b)
    out_b = jax.block_until_ready(bpr_loss(pos_b, neg_b))
    assert jnp.allclose(out_b, ref_b, rtol=1e-4, atol=1e-2), (out_b, ref_b)

    # 3) Forced small blocks -> even block count -> 2-way "parallel" split path.
    out_b2 = jax.block_until_ready(
        bpr_loss(pos_b, neg_b, target_block_bytes=384 * 1024))
    assert jnp.allclose(out_b2, ref_b, rtol=1e-4, atol=1e-2), (out_b2, ref_b)

    # 4) Forced smaller blocks -> odd block count -> ragged-last-block masking.
    out_b3 = jax.block_until_ready(
        bpr_loss(pos_b, neg_b, target_block_bytes=256 * 1024))
    assert jnp.allclose(out_b3, ref_b, rtol=1e-4, atol=1e-2), (out_b3, ref_b)

    # 5) bf16 streaming path (native-dtype blocks, f32 accumulation).
    pos_h = pos_b.astype(jnp.bfloat16)
    neg_h = neg_b.astype(jnp.bfloat16)
    out_h = jax.block_until_ready(
        bpr_loss(pos_h, neg_h, target_block_bytes=256 * 1024))
    assert jnp.allclose(out_h, ref_loss(pos_h, neg_h), rtol=1e-4, atol=1.0), out_h

    # 6) 1-D prediction vectors (one score per (user, pos_item, neg_item)).
    pos_v = jax.random.normal(k1, (333,), dtype=jnp.float32)
    neg_v = jax.random.normal(k2, (333,), dtype=jnp.float32)
    out_v = jax.block_until_ready(bpr_loss(pos_v, neg_v))
    assert jnp.allclose(out_v, ref_loss(pos_v, neg_v), rtol=1e-5, atol=1e-4), out_v

    print("KERNEL_OK")
</pallas_src>

<mosaic_0001>
module attributes {stable_mosaic.version = 11 : i64} {
  func.func @_bpr_small_kernel(%arg0: memref<5x7xf32, #tpu.memory_space<vmem>>, %arg1: memref<5x7xf32, #tpu.memory_space<vmem>>, %arg2: memref<1x7xf32, #tpu.memory_space<vmem>>) attributes {dimension_semantics = [], scalar_prefetch = 0 : i64, scratch_operands = 0 : i64, tpu.core_type = #tpu.core_type<tc>} {
    %c0 = arith.constant 0 : index
    %c0_0 = arith.constant 0 : index
    %0 = vector.load %arg0[%c0, %c0_0] : memref<5x7xf32, #tpu.memory_space<vmem>>, vector<5x7xf32>
    %c0_1 = arith.constant 0 : index
    %c0_2 = arith.constant 0 : index
    %1 = vector.load %arg1[%c0_1, %c0_2] : memref<5x7xf32, #tpu.memory_space<vmem>>, vector<5x7xf32>
    %2 = arith.subf %0, %1 : vector<5x7xf32>
    %cst = arith.constant 0.000000e+00 : f32
    %3 = vector.broadcast %cst : f32 to vector<5x7xf32>
    %4 = arith.subf %3, %2 : vector<5x7xf32>
    %cst_3 = arith.constant 0.000000e+00 : f32
    %5 = vector.broadcast %cst_3 : f32 to vector<5x7xf32>
    %6 = arith.maximumf %4, %5 : vector<5x7xf32>
    %7 = math.absf %2 : vector<5x7xf32>
    %cst_4 = arith.constant 0.000000e+00 : f32
    %8 = vector.broadcast %cst_4 : f32 to vector<5x7xf32>
    %9 = arith.subf %8, %7 : vector<5x7xf32>
    %10 = math.exp %9 : vector<5x7xf32>
    %cst_5 = arith.constant 1.000000e+00 : f32
    %11 = vector.broadcast %cst_5 : f32 to vector<5x7xf32>
    %12 = arith.addf %11, %10 : vector<5x7xf32>
    %13 = math.log %12 : vector<5x7xf32>
    %14 = arith.addf %6, %13 : vector<5x7xf32>
    %cst_6 = arith.constant dense<0.000000e+00> : vector<7xf32>
    %15 = vector.multi_reduction <add>, %14, %cst_6 [0] : vector<5x7xf32> to vector<7xf32>
    %16 = vector.shape_cast %15 : vector<7xf32> to vector<1x7xf32>
    %c0_7 = arith.constant 0 : index
    %c0_8 = arith.constant 0 : index
    %17 = vector.load %arg2[%c0_7, %c0_8] : memref<1x7xf32, #tpu.memory_space<vmem>>, vector<1x7xf32>
    tpu.vector_store %arg2[%c0_7, %c0_8], %16 {strides = array<i32>} : memref<1x7xf32, #tpu.memory_space<vmem>>, vector<1x7xf32>,
    return
  }
}

</mosaic_0001>

<bundles_post_ra>
// kernel: tpu_custom_call.1
= control target key start
LH: loop header
LB: loop body
LE: loop exit
PB: predicated region body
PF: predicated region fallthrough
CT: control target
= control target key end

     0   :  { %7 = vsyncpa [#allocation3], 0  ;;  %s193_s0 = inlined_call_operand.hbm [shape: f32[5,7], index: 0, kind: input, shape index: {}]   ;;  %s194_s1 = inlined_call_operand.hbm [shape: f32[5,7], index: 1, kind: input, shape index: {}]   ;;  %s195_s2 = inlined_call_operand.hbm [shape: f32[1,7], index: 2, kind: output, shape index: {}]  }
   0x1   :  { %8 = vsyncpa [#allocation6], 0 }
   0x2   :  { %9 = vsyncpa [#allocation4], 0  ;;  %s15_s11 = sshll.u32 %s193_s0, 4  ;;  %s166_s12 = smov [#allocation2]   ;;  %s16_s11 = int_to_ptr.hbm [resolvable:$true] %s15_s11 }
   0x3   :  { %s17_s13 = sshll.u32 %s166_s12, 4  ;;  %s26_s16 = sshll.u32 %s194_s1, 4  ;;  %s18_s13 = int_to_ptr.vmem [resolvable:$true] %s17_s13  ;;  %s27_s16 = int_to_ptr.hbm [resolvable:$true] %s26_s16 }
   0x4   :  { %20 = dma.hbm_to_vmem [thread:$0]  %s16_s11, 128, %s18_s13, [#allocation3]  }
   0x5   :  { %s167_s17 = smov [#allocation5]  }
   0x6   :  { %s28_s18 = sshll.u32 %s167_s17, 4  ;;  %s29_s18 = int_to_ptr.vmem [resolvable:$true] %s28_s18 }
   0x7   :  { %31 = dma.hbm_to_vmem [thread:$0]  %s27_s16, 128, %s29_s18, [#allocation6]  }
   0x8   :  { %160 = dma.done.wait [#allocation3], 128  }
   0x9   :  { %161 = vsyncadd [#allocation3], 4294967168 }
   0xa   :  { %162 = dma.done.wait [#allocation6], 128  }
   0xb   :  { %163 = vsyncadd [#allocation6], 4294967168  ;;  %v40_v0 = vld [vmem:[#allocation2] sm:$0x1f]  ;;  %v41_v1 = vld [vmem:[#allocation5] sm:$0x1f] }
   0xc   :  { %v42_v2 = vsub.f32 %v40_v0, %v41_v1  ;;  %vm53_vm0 = vcmask 53248   ;;  %s168_s0 = smov [#allocation7]   ;;  %s70_s21 = sshll.u32 %s195_s2, 4  ;;  %vm61_vm1 = vcmask 49152   ;;  %s71_s21 = int_to_ptr.hbm [resolvable:$true] %s70_s21 }
   0xd   :  { %s68_s1 = sshll.u32 %s168_s0, 4  ;;  %s69_s1 = int_to_ptr.vmem [resolvable:$true] %s68_s1 }
   0xe   :  { %v45_v3 = vand.u32 2147483647, %v42_v2  ;;  %v43_v8 = vsub.f32 0.0, %v42_v2 }
  0x10   :  { %v46_v4 = vsub.f32 0.0, %v45_v3  ;;  %v44_v9 = vmax.f32 %v43_v8, 0.0 }
  0x12   :  { %v47_v5 = vmul.f32 1.442695, %v46_v4 }
  0x14   :  { %84 = vpow2.f32 %v47_v5 }
  0x1a   :  { %v85_v6 = vpop.eup %84 }
  0x1b   :  { %v49_v7 = vadd.f32 1.0, %v85_v6 }
  0x1d   :  { %86 = vlog2.f32 %v49_v7 }
  0x23   :  { %v87_v10 = vpop.eup %86 }
  0x24   :  { %v51_v11 = vmul.f32 0.6931472, %v87_v10 }
  0x26   :  { %v52_v12 = vadd.f32 %v51_v11, %v44_v9 }
  0x28   :  { %v54_v13 = vsel %vm53_vm0, %v52_v12, 0.0 }
  0x29   :  { %v55_v14 = vrot.slane %v54_v13, 4 }
  0x2b   :  { %v56_v15 = vadd.f32 %v55_v14, %v54_v13 }
  0x2d   :  { %v57_v16 = vrot.slane %v56_v15, 2 }
  0x2f   :  { %v58_v17 = vadd.f32 %v57_v16, %v56_v15 }
  0x31   :  { %v59_v18 = vrot.slane %v58_v17, 1 }
  0x33   :  { %v60_v19 = vadd.f32 %v59_v18, %v58_v17 }
  0x35   :  { %62 = vst.msk [vmem:[#allocation7] sm:$0x1] %vm61_vm1, %v60_v19 }
  0x36   :  { %73 = dma.vmem_to_hbm [thread:$0]  %s69_s1, 16, %s71_s21, [#allocation4]  }
  0x37   :  { %164 = dma.done.wait [#allocation4], 16  }
  0x38   :  { %165 = vsyncadd [#allocation4], 4294967280 }
  0x39   :  { %78 = vsyncpa [#allocation3], 1 }
  0x3a   :  { %79 = vsyncpa [#allocation6], 1 }
  0x3b   :  { %80 = vsyncpa [#allocation4], 1 }

</bundles_post_ra>
